<compile_context>
chip_gen: v5e
topology: v5e:2x2
jax: 0.10.0
libtpu: 0.0.40
codegen_flags: <defaults>
</compile_context>

<pallas_src>
import functools

import jax
import jax.numpy as jnp
from jax.experimental import pallas as pl
from jax.experimental.pallas import tpu as pltpu

LANE = 128
TARGET_STREAM_BYTES = 4 * 1024 * 1024   # per input stream, per pipeline buffer
SUB_ROWS = 512                          # in-kernel sub-tile (rows)
NUM_CORES = 2                           # v7x megacore split; cheap 2-iter outer loop on 1-TC chips
VMEM_LIMIT = 32 * 1024 * 1024


def _dice_kernel(x_ref, t_ref, out_ref, acc_ref, *, block_rows, sub_rows):
    """Accumulate per-lane partial sums for the dice loss.

    acc_ref: (3, 128) f32 VMEM scratch, persistent across the reduction grid axis:
      row 0: sum(sigmoid(x) * t)   (intersection)
      row 1: sum(sigmoid(x))
      row 2: sum(t)
    out_ref: (1, 3, 128) output block, written once on the last reduction step.
    """
    i = pl.program_id(1)

    @pl.when(i == 0)
    def _():
        acc_ref[...] = jnp.zeros_like(acc_ref)

    def accum(x_blk, t_blk):
        x = x_blk.astype(jnp.float32)
        t = t_blk.astype(jnp.float32)
        s = jax.nn.sigmoid(x)
        # Sublane-axis reductions only (VALU adds + one intra-vreg fold); the
        # expensive cross-lane reduce happens once, outside the kernel.
        acc_ref[0, :] += jnp.sum(s * t, axis=0)
        acc_ref[1, :] += jnp.sum(s, axis=0)
        acc_ref[2, :] += jnp.sum(t, axis=0)

    n_full = block_rows // sub_rows
    tail_rows = block_rows - n_full * sub_rows

    if n_full == 1 and tail_rows == 0:
        # Small single-chunk block: process directly.
        accum(x_ref[...], t_ref[...])
    else:
        # Chunk the block so elementwise intermediates stay small (no VMEM spills).
        @pl.loop(0, n_full)
        def _(j):
            r0 = pl.multiple_of(j * sub_rows, sub_rows)
            accum(x_ref[pl.ds(r0, sub_rows), :], t_ref[pl.ds(r0, sub_rows), :])

        if tail_rows > 0:
            r0 = n_full * sub_rows  # static offset
            accum(x_ref[pl.ds(r0, tail_rows), :], t_ref[pl.ds(r0, tail_rows), :])

    @pl.when(i == pl.num_programs(1) - 1)
    def _():
        out_ref[0] = acc_ref[...]


def _sums_jnp(x, t):
    """Reference-style (sum(sig*t), sum(sig), sum(t)) for the small ragged tail."""
    s = jax.nn.sigmoid(x.astype(jnp.float32))
    tf = t.astype(jnp.float32)
    return jnp.stack([jnp.sum(s * tf), jnp.sum(s), jnp.sum(tf)])


def dice_loss(inputs, targets, smooth=1.0):
    """Pallas equivalent of DiceLoss.forward(inputs, targets, smooth)."""
    x = inputs.reshape(-1)
    t = targets.reshape(-1)
    n = x.shape[0]
    if n == 0:
        return jnp.float32(0.0)

    # Rare fallback: if the flat size isn't a lane multiple, pad with zeros up to the
    # next multiple of 128 so the reshape to (rows, 128) stays a free bitcast.
    # Each padded x element contributes exactly sigmoid(0)=0.5 to sum_s; the pad count
    # is static, so it is subtracted exactly below.  Padded t == 0 contributes nothing.
    pad_correction = 0.0
    rem = n % LANE
    if rem:
        pad = LANE - rem
        x = jnp.pad(x, (0, pad))
        t = jnp.pad(t, (0, pad))
        pad_correction = 0.5 * pad
        n += pad

    rows_total = n // LANE
    x2 = x.reshape(rows_total, LANE)   # free (row-major bitcast)
    t2 = t.reshape(rows_total, LANE)

    # Dtype-aware block size: ~TARGET_STREAM_BYTES per stream per pipeline buffer,
    # kept a multiple of SUB_ROWS so the in-kernel sub-tiling divides evenly.
    itemsize = max(x2.dtype.itemsize, t2.dtype.itemsize)
    budget_rows = max(SUB_ROWS,
                      (TARGET_STREAM_BYTES // (LANE * itemsize)) // SUB_ROWS * SUB_ROWS)

    if rows_total <= budget_rows:
        block_rows = rows_total          # single block == full dim (always a legal block shape)
        nc, num_blocks = 1, 1
    else:
        block_rows = budget_rows
        nb = rows_total // block_rows    # number of full blocks available (>= 1)
        nc = NUM_CORES if nb >= NUM_CORES else 1
        num_blocks = (nb // nc) * nc
    steps = num_blocks // nc
    bulk_rows = num_blocks * block_rows

    sub_rows = min(SUB_ROWS, block_rows)
    kernel = functools.partial(_dice_kernel, block_rows=block_rows, sub_rows=sub_rows)

    in_blk = pl.BlockSpec((block_rows, LANE), lambda c, i: (c * steps + i, 0))
    bulk_elems = bulk_rows * LANE
    cost = pl.CostEstimate(
        flops=5 * bulk_elems,
        transcendentals=bulk_elems,
        bytes_accessed=bulk_elems * (x2.dtype.itemsize + t2.dtype.itemsize)
        + nc * 3 * LANE * 4)

    partials = pl.pallas_call(
        kernel,
        out_shape=jax.ShapeDtypeStruct((nc, 3, LANE), jnp.float32),
        grid_spec=pltpu.PrefetchScalarGridSpec(
            num_scalar_prefetch=0,
            grid=(nc, steps),
            in_specs=[in_blk, in_blk],
            out_specs=pl.BlockSpec((1, 3, LANE), lambda c, i: (c, 0, 0)),
            scratch_shapes=[pltpu.VMEM((3, LANE), jnp.float32)],
        ),
        compiler_params=pltpu.CompilerParams(
            dimension_semantics=("parallel", "arbitrary"),
            vmem_limit_bytes=VMEM_LIMIT),
        cost_estimate=cost,
    )(x2, t2)

    # Tiny cross-lane + cross-core combine, done once outside the kernel.
    sums = jnp.sum(partials, axis=(0, 2))   # (3,)

    # Ragged tail not covered by the kernel grid (< nc * block_rows rows): small,
    # handled with plain jnp and folded into the partial sums (no full-array copy).
    if bulk_rows < rows_total:
        sums = sums + _sums_jnp(x2[bulk_rows:], t2[bulk_rows:])

    intersection = sums[0]
    sum_s = sums[1] - pad_correction
    sum_t = sums[2]
    dice = (2.0 * intersection + smooth) / (sum_s + sum_t + smooth)
    return 1.0 - dice


def _dice_loss_ref(inputs, targets, smooth=1.0):
    s = jax.nn.sigmoid(inputs.reshape(-1).astype(jnp.float32))
    t = targets.reshape(-1).astype(jnp.float32)
    inter = jnp.sum(s * t)
    dice = (2.0 * inter + smooth) / (jnp.sum(s) + jnp.sum(t) + smooth)
    return 1.0 - dice


if __name__ == "__main__":
    key = jax.random.PRNGKey(0)
    k1, k2, k3, k4 = jax.random.split(key, 4)

    # Small segmentation-style shapes: NCHW logits + binary mask.
    x = jax.random.normal(k1, (2, 4, 16, 16), dtype=jnp.float32)
    tgt = (jax.random.uniform(k2, (2, 4, 16, 16)) > 0.5).astype(jnp.float32)

    loss = dice_loss(x, tgt, smooth=1.0)
    jax.block_until_ready(loss)
    ref = _dice_loss_ref(x, tgt, smooth=1.0)
    assert jnp.allclose(loss, ref, atol=1e-5, rtol=1e-5), (loss, ref)

    # Second check: large enough to exercise the multi-block / 2-core / ragged-tail /
    # lane-padding paths (still only ~21 MB per array).
    n_big = 41000 * LANE + 77
    xb = jax.random.normal(k3, (n_big,), dtype=jnp.float32)
    tb = (jax.random.uniform(k4, (n_big,)) > 0.5).astype(jnp.float32)
    loss_b = dice_loss(xb, tb, smooth=1.0)
    jax.block_until_ready(loss_b)
    ref_b = _dice_loss_ref(xb, tb, smooth=1.0)
    assert jnp.allclose(loss_b, ref_b, atol=1e-3, rtol=1e-3), (loss_b, ref_b)

    print("KERNEL_OK")
</pallas_src>

<mosaic_0001>
module attributes {stable_mosaic.version = 11 : i64} {
  func.func @_dice_kernel(%arg0: i32, %arg1: i32, %arg2: memref<16x128xf32, #tpu.memory_space<vmem>>, %arg3: memref<16x128xf32, #tpu.memory_space<vmem>>, %arg4: memref<1x3x128xf32, #tpu.memory_space<vmem>>, %arg5: memref<3x128xf32, #tpu.memory_space<vmem>>) attributes {dimension_semantics = [#tpu.dimension_semantics<parallel>, #tpu.dimension_semantics<arbitrary>], iteration_bounds = array<i64: 1, 1>, scalar_prefetch = 0 : i64, scratch_operands = 1 : i64, tpu.core_type = #tpu.core_type<tc>, window_params = [{transform_indices = @transform_0, window_bounds = array<i64: 16, 128>}, {transform_indices = @transform_1, window_bounds = array<i64: 16, 128>}, {transform_indices = @transform_2, window_bounds = array<i64: 1, 3, 128>}]} {
    %c0_i32 = arith.constant 0 : i32
    %0 = arith.cmpi eq, %arg1, %c0_i32 : i32
    %1 = arith.extui %0 : i1 to i32
    %c0_i32_0 = arith.constant 0 : i32
    %2 = arith.cmpi ne, %1, %c0_i32_0 : i32
    scf.if %2 {
      %cst_19 = arith.constant 0.000000e+00 : f32
      %35 = vector.broadcast %cst_19 : f32 to vector<3x128xf32>
      %c0_20 = arith.constant 0 : index
      %c0_21 = arith.constant 0 : index
      %36 = vector.load %arg5[%c0_20, %c0_21] : memref<3x128xf32, #tpu.memory_space<vmem>>, vector<3x128xf32>
      tpu.vector_store %arg5[%c0_20, %c0_21], %35 {strides = array<i32>} : memref<3x128xf32, #tpu.memory_space<vmem>>, vector<3x128xf32>,
    } else {
    }
    %c0 = arith.constant 0 : index
    %c0_1 = arith.constant 0 : index
    %3 = vector.load %arg2[%c0, %c0_1] : memref<16x128xf32, #tpu.memory_space<vmem>>, vector<16x128xf32>
    %c0_2 = arith.constant 0 : index
    %c0_3 = arith.constant 0 : index
    %4 = vector.load %arg3[%c0_2, %c0_3] : memref<16x128xf32, #tpu.memory_space<vmem>>, vector<16x128xf32>
    %5 = arith.negf %3 : vector<16x128xf32>
    %6 = math.exp %5 : vector<16x128xf32>
    %cst = arith.constant 1.000000e+00 : f32
    %7 = vector.broadcast %cst : f32 to vector<16x128xf32>
    %8 = arith.addf %7, %6 : vector<16x128xf32>
    %9 = arith.divf %7, %8 : vector<16x128xf32>
    %c0_4 = arith.constant 0 : index
    %c0_5 = arith.constant 0 : index
    %10 = vector.load %arg5[%c0_4, %c0_5] : memref<3x128xf32, #tpu.memory_space<vmem>>, vector<1x128xf32>
    %11 = vector.shape_cast %10 : vector<1x128xf32> to vector<128xf32>
    %12 = arith.mulf %9, %4 : vector<16x128xf32>
    %cst_6 = arith.constant dense<0.000000e+00> : vector<128xf32>
    %13 = vector.multi_reduction <add>, %12, %cst_6 [0] : vector<16x128xf32> to vector<128xf32>
    %14 = arith.addf %11, %13 : vector<128xf32>
    %c0_7 = arith.constant 0 : index
    %c0_8 = arith.constant 0 : index
    %15 = vector.load %arg5[%c0_7, %c0_8] : memref<3x128xf32, #tpu.memory_space<vmem>>, vector<1x128xf32>
    %16 = vector.shape_cast %15 : vector<1x128xf32> to vector<128xf32>
    %17 = vector.shape_cast %14 : vector<128xf32> to vector<1x128xf32>
    tpu.vector_store %arg5[%c0_7, %c0_8], %17 {strides = array<i32>} : memref<3x128xf32, #tpu.memory_space<vmem>>, vector<1x128xf32>,
    %c1 = arith.constant 1 : index
    %c0_9 = arith.constant 0 : index
    %18 = vector.load %arg5[%c1, %c0_9] : memref<3x128xf32, #tpu.memory_space<vmem>>, vector<1x128xf32>
    %19 = vector.shape_cast %18 : vector<1x128xf32> to vector<128xf32>
    %cst_10 = arith.constant dense<0.000000e+00> : vector<128xf32>
    %20 = vector.multi_reduction <add>, %9, %cst_10 [0] : vector<16x128xf32> to vector<128xf32>
    %21 = arith.addf %19, %20 : vector<128xf32>
    %c1_11 = arith.constant 1 : index
    %c0_12 = arith.constant 0 : index
    %22 = vector.load %arg5[%c1_11, %c0_12] : memref<3x128xf32, #tpu.memory_space<vmem>>, vector<1x128xf32>
    %23 = vector.shape_cast %22 : vector<1x128xf32> to vector<128xf32>
    %24 = vector.shape_cast %21 : vector<128xf32> to vector<1x128xf32>
    tpu.vector_store %arg5[%c1_11, %c0_12], %24 {strides = array<i32>} : memref<3x128xf32, #tpu.memory_space<vmem>>, vector<1x128xf32>,
    %c2 = arith.constant 2 : index
    %c0_13 = arith.constant 0 : index
    %25 = vector.load %arg5[%c2, %c0_13] : memref<3x128xf32, #tpu.memory_space<vmem>>, vector<1x128xf32>
    %26 = vector.shape_cast %25 : vector<1x128xf32> to vector<128xf32>
    %cst_14 = arith.constant dense<0.000000e+00> : vector<128xf32>
    %27 = vector.multi_reduction <add>, %4, %cst_14 [0] : vector<16x128xf32> to vector<128xf32>
    %28 = arith.addf %26, %27 : vector<128xf32>
    %c2_15 = arith.constant 2 : index
    %c0_16 = arith.constant 0 : index
    %29 = vector.load %arg5[%c2_15, %c0_16] : memref<3x128xf32, #tpu.memory_space<vmem>>, vector<1x128xf32>
    %30 = vector.shape_cast %29 : vector<1x128xf32> to vector<128xf32>
    %31 = vector.shape_cast %28 : vector<128xf32> to vector<1x128xf32>
    tpu.vector_store %arg5[%c2_15, %c0_16], %31 {strides = array<i32>} : memref<3x128xf32, #tpu.memory_space<vmem>>, vector<1x128xf32>,
    %c0_i32_17 = arith.constant 0 : i32
    %32 = arith.cmpi eq, %arg1, %c0_i32_17 : i32
    %33 = arith.extui %32 : i1 to i32
    %c0_i32_18 = arith.constant 0 : i32
    %34 = arith.cmpi ne, %33, %c0_i32_18 : i32
    scf.if %34 {
      %c0_19 = arith.constant 0 : index
      %c0_20 = arith.constant 0 : index
      %35 = vector.load %arg5[%c0_19, %c0_20] : memref<3x128xf32, #tpu.memory_space<vmem>>, vector<3x128xf32>
      %c0_21 = arith.constant 0 : index
      %c0_22 = arith.constant 0 : index
      %c0_23 = arith.constant 0 : index
      %36 = vector.load %arg4[%c0_21, %c0_22, %c0_23] : memref<1x3x128xf32, #tpu.memory_space<vmem>>, vector<1x3x128xf32>
      %37 = vector.shape_cast %36 : vector<1x3x128xf32> to vector<3x128xf32>
      %38 = vector.shape_cast %35 : vector<3x128xf32> to vector<1x3x128xf32>
      tpu.vector_store %arg4[%c0_21, %c0_22, %c0_23], %38 {strides = array<i32>} : memref<1x3x128xf32, #tpu.memory_space<vmem>>, vector<1x3x128xf32>,
    } else {
    }
    return
  }
  func.func @transform_0(%arg0: i32, %arg1: i32) -> (i32, i32) {
    %c1_i32 = arith.constant 1 : i32
    %0 = arith.muli %arg0, %c1_i32 : i32
    %1 = arith.addi %0, %arg1 : i32
    %c0_i32 = arith.constant 0 : i32
    %c0_i32_0 = arith.constant 0 : i32
    return %1, %c0_i32 : i32, i32
  }
  func.func @transform_1(%arg0: i32, %arg1: i32) -> (i32, i32) {
    %c1_i32 = arith.constant 1 : i32
    %0 = arith.muli %arg0, %c1_i32 : i32
    %1 = arith.addi %0, %arg1 : i32
    %c0_i32 = arith.constant 0 : i32
    %c0_i32_0 = arith.constant 0 : i32
    return %1, %c0_i32 : i32, i32
  }
  func.func @transform_2(%arg0: i32, %arg1: i32) -> (i32, i32, i32) {
    %c0_i32 = arith.constant 0 : i32
    %c0_i32_0 = arith.constant 0 : i32
    %c0_i32_1 = arith.constant 0 : i32
    return %arg0, %c0_i32, %c0_i32_0 : i32, i32, i32
  }
}

</mosaic_0001>

<bundles_post_ra>
// kernel: tpu_custom_call.1
= control target key start
LH: loop header
LB: loop body
LE: loop exit
PB: predicated region body
PF: predicated region fallthrough
CT: control target
= control target key end

     0   :  { %7 = vsyncpa [#allocation4], 0  ;;  %s241_s0 = inlined_call_operand.hbm [shape: f32[16,128], index: 0, kind: input, shape index: {}]   ;;  %s242_s1 = inlined_call_operand.hbm [shape: f32[16,128], index: 1, kind: input, shape index: {}]   ;;  %s243_s2 = inlined_call_operand.vmem [shape: f32[1,3,128], index: 2, kind: output, shape index: {}]  }
   0x1   :  { %s17_s11 = sshll.u32 %s241_s0, 4  ;;  %s18_s11 = int_to_ptr.hbm [resolvable:$true] %s17_s11 }
   0x2   :  { %8 = vsyncpa [#allocation6], 0  ;;  %s212_s12 = smov [#allocation3]   ;;  %s34_s16 = sshll.u32 %s242_s1, 4  ;;  %s35_s16 = int_to_ptr.hbm [resolvable:$true] %s34_s16 }
   0x3   :  { %s19_s13 = sshll.u32 %s212_s12, 4  ;;  %s213_s17 = smov 128   ;;  %s20_s13 = int_to_ptr.vmem [resolvable:$true] %s19_s13 }
   0x4   :  { %s214_s18 = smov 8   ;;  %s215_s19 = smov [#allocation5]  }
   0x5   :  { %25 = dma.hbm_to_vmem [thread:$0]  %s18_s11, 256, %s20_s13, [#allocation4], %s213_s17, %s213_s17, %s214_s18  }
   0x6   :  { %s36_s20 = sshll.u32 %s215_s19, 4  ;;  %s37_s20 = int_to_ptr.vmem [resolvable:$true] %s36_s20 }
   0x7   :  { %42 = dma.hbm_to_vmem [thread:$0]  %s35_s16, 256, %s37_s20, [#allocation6], %s213_s17, %s213_s17, %s214_s18  }
   0x8   :  { %208 = dma.done.wait [#allocation4], 256  }
   0x9   :  { %209 = vsyncadd [#allocation4], 4294967040 }
   0xa   :  { %210 = dma.done.wait [#allocation6], 256  }
   0xb   :  { %211 = vsyncadd [#allocation6], 4294967040  ;;  %v216_v0 = vmov 0.0   ;;  %v60_v1 = vld [vmem:[#allocation3] sm:$0xff]  ;;  %v61_v2 = vld [vmem:[#allocation3 + $0x8] sm:$0xff] }
   0xc   :  { %59 = vst [vmem:[#allocation2] sm:$0x7] %v216_v0  ;;  %v62_v3 = vld [vmem:[#allocation5] sm:$0xff]  ;;  %v63_v4 = vld [vmem:[#allocation5 + $0x8] sm:$0xff]  ;;  %v145_v5 = vmul.f32 -1.442695, %v60_v1 }
   0xd   :  { %v146_v6 = vmul.f32 -1.442695, %v61_v2  ;;  %v125_v7 = vadd.f32 %v63_v4, %v62_v3 }
   0xe   :  { %152 = vpow2.f32 %v145_v5 }
   0xf   :  { %154 = vpow2.f32 %v146_v6  ;;  %v126_v8 = vrot.slane %v125_v7, 4 }
  0x11   :  { %v127_v9 = vadd.f32 %v126_v8, %v125_v7 }
  0x13   :  { %v128_v10 = vrot.slane %v127_v9, 2  ;;  %v124_v17 = vld [vmem:[#allocation2 + $0x2] sm:$0x1]  ;;  %v114_v53 = vld [vmem:[#allocation2 + $0x1] sm:$0x1] }
  0x14   :  { %v153_v11 = vpop.eup %152  ;;  %v102_v56 = vld [vmem:[#allocation2] sm:$0x1] }
  0x15   :  { %v155_v12 = vpop.eup %154  ;;  %v70_v13 = vadd.f32 1.0, %v153_v11  ;;  %v129_v14 = vadd.f32 %v128_v10, %v127_v9 }
  0x16   :  { %v71_v15 = vadd.f32 1.0, %v155_v12 }
  0x17   :  { %156 = vrcp.f32 %v70_v13  ;;  %v130_v16 = vrot.slane %v129_v14, 1  ;;  %vm77_vm0 = vweird.f32 %v70_v13  ;;  %v83_v23 = vand.u32 2147483648, %v70_v13 }
  0x18   :  { %158 = vrcp.f32 %v71_v15  ;;  %v81_v26 = vand.u32 2147483647, %v70_v13  ;;  %v98_v27 = vand.u32 2147483648, %v71_v15  ;;  %vm92_vm2 = vweird.f32 %v71_v15 }
  0x19   :  { %v131_v18 = vadd.f32 %v130_v16, %v129_v14  ;;  %v96_v29 = vand.u32 2147483647, %v71_v15  ;;  %v84_v31 = vor.u32 1.1754944e-38, %v83_v23 }
  0x1a   :  { %vm82_vm5 = vcmp.eq.f32.partialorder %v81_v26, 8.507059e+37  ;;  %v99_v34 = vor.u32 1.1754944e-38, %v98_v27 }
  0x1b   :  { %v132_v20 = vadd.f32 %v131_v18, %v124_v17  ;;  %vm97_vm7 = vcmp.eq.f32.partialorder %v96_v29, 8.507059e+37 }
  0x1d   :  { %v157_v19 = vpop.eup %156  ;;  %133 = vst [vmem:[#allocation2 + $0x2] sm:$0x1] %v132_v20 }
  0x1e   :  { %v159_v21 = vpop.eup %158  ;;  %v73_v22 = vmul.f32 %v157_v19, %v70_v13  ;;  %vm78_vm1 = vweird.f32 %v157_v19 }
  0x1f   :  { %v88_v24 = vmul.f32 %v159_v21, %v71_v15  ;;  %vm93_vm3 = vweird.f32 %v159_v21  ;;  %vm79_vm4 = vmor %vm77_vm0, %vm78_vm1 }
  0x20   :  { %v74_v25 = vsub.f32 1.0, %v73_v22  ;;  %vm94_vm6 = vmor %vm92_vm2, %vm93_vm3 }
  0x21   :  { %v89_v28 = vsub.f32 1.0, %v88_v24 }
  0x22   :  { %v75_v30 = vmul.f32 %v157_v19, %v74_v25 }
  0x23   :  { %v90_v32 = vmul.f32 %v159_v21, %v89_v28 }
  0x24   :  { %v76_v33 = vadd.f32 %v157_v19, %v75_v30 }
  0x25   :  { %v91_v35 = vadd.f32 %v159_v21, %v90_v32 }
  0x26   :  { %v80_v36 = vsel %vm79_vm4, %v157_v19, %v76_v33 }
  0x27   :  { %v85_v37 = vsel %vm82_vm5, %v84_v31, %v80_v36  ;;  %v95_v38 = vsel %vm94_vm6, %v159_v21, %v91_v35 }
  0x28   :  { %v100_v39 = vsel %vm97_vm7, %v99_v34, %v95_v38  ;;  %v103_v40 = vmul.f32 %v85_v37, %v62_v3 }
  0x29   :  { %v104_v41 = vmul.f32 %v100_v39, %v63_v4  ;;  %v115_v42 = vadd.f32 %v100_v39, %v85_v37 }
  0x2b   :  { %v105_v43 = vadd.f32 %v104_v41, %v103_v40  ;;  %v116_v44 = vrot.slane %v115_v42, 4 }
  0x2d   :  { %v106_v45 = vrot.slane %v105_v43, 4  ;;  %v117_v46 = vadd.f32 %v116_v44, %v115_v42 }
  0x2f   :  { %v107_v47 = vadd.f32 %v106_v45, %v105_v43  ;;  %v118_v48 = vrot.slane %v117_v46, 2 }
  0x31   :  { %v108_v49 = vrot.slane %v107_v47, 2  ;;  %v119_v50 = vadd.f32 %v118_v48, %v117_v46 }
  0x33   :  { %v109_v51 = vadd.f32 %v108_v49, %v107_v47  ;;  %v120_v52 = vrot.slane %v119_v50, 1 }
  0x35   :  { %v110_v54 = vrot.slane %v109_v51, 1  ;;  %v121_v55 = vadd.f32 %v120_v52, %v119_v50 }
  0x37   :  { %v111_v57 = vadd.f32 %v110_v54, %v109_v51  ;;  %v122_v58 = vadd.f32 %v121_v55, %v114_v53 }
  0x39   :  { %v112_v59 = vadd.f32 %v111_v57, %v102_v56  ;;  %123 = vst [vmem:[#allocation2 + $0x1] sm:$0x1] %v122_v58 }
  0x3b   :  { %113 = vst [vmem:[#allocation2] sm:$0x1] %v112_v59 }
  0x42   :  { %v137_v60 = vld [vmem:[#allocation2] sm:$0x7] }
  0x43   :  { %138 = vst [vmem:[%s243_s2] sm:$0x7] %v137_v60 }
  0x44   :  { %143 = vsyncpa [#allocation4], 1 }
  0x45   :  { %144 = vsyncpa [#allocation6], 1 }

</bundles_post_ra>
